<compile_context>
chip_gen: v7x
topology: tpu7x:2x2x1
jax: 0.10.0
libtpu: 0.0.40
codegen_flags: <defaults>
</compile_context>

<pallas_src>
import jax
import jax.numpy as jnp
from jax import lax
from jax.experimental import pallas as pl
from jax.experimental.pallas import tpu as pltpu

EPS = 1e-5
LANE = 128
BF16, F32 = 2, 4  # bytes per element


def _round_up(x, m):
    return (x + m - 1) // m * m


def _layernorm(h, gamma, beta):
    # Single-pass statistics: E[h] and E[h^2] over the feature axis (f32 accumulation),
    # var = E[h^2] - E[h]^2.  One data sweep instead of two.
    mean = jnp.mean(h, axis=-1, keepdims=True)
    mean_sq = jnp.mean(h * h, axis=-1, keepdims=True)
    var = mean_sq - mean * mean
    return (h - mean) * lax.rsqrt(var + EPS) * gamma + beta


def _res_block(h, w, aff):
    """One ResBlock: h + LayerNorm(ReLU(h @ w + b)).  aff rows = [bias; gamma; beta]."""
    z = jnp.dot(h.astype(jnp.bfloat16), w, preferred_element_type=jnp.float32)
    z = jnp.maximum(z + aff[0:1], 0.0)
    z = _layernorm(z, aff[1:2], aff[2:3])
    return h + z


# ---------------------------------------------------------------------------
# Kernel A: resident residual weights (preferred).  grid = (batch_tiles,)
# ---------------------------------------------------------------------------
def resmlp_resident_kernel(x_ref, w_in_ref, stem_aff_ref,
                           w_res_ref, res_aff_ref,
                           w_out_ref, b_out_ref, o_ref):
    n_res = w_res_ref.shape[0]

    # Stem: Linear -> ReLU -> LayerNorm (bf16 matmul, f32 accumulate / elementwise).
    stem_aff = stem_aff_ref[...]                                       # (3, width)
    h = jnp.dot(x_ref[...], w_in_ref[...], preferred_element_type=jnp.float32)
    h = jnp.maximum(h + stem_aff[0:1], 0.0)
    h = _layernorm(h, stem_aff[1:2], stem_aff[2:3])

    # Residual blocks: weights are VMEM-resident; unrolled loop keeps LLO visibility.
    def body(d, h):
        return _res_block(h, w_res_ref[d], res_aff_ref[d])
    h = lax.fori_loop(0, n_res, body, h, unroll=True)

    # Head: Linear into the lane-dense padded output tile.
    out = jnp.dot(h.astype(jnp.bfloat16), w_out_ref[...],
                  preferred_element_type=jnp.float32) + b_out_ref[...]
    o_ref[...] = out.astype(o_ref.dtype)


# ---------------------------------------------------------------------------
# Kernel B: layer-blocked streaming fallback.  grid = (batch_tiles, n_steps),
# L layers streamed per step; hidden state persists in a VMEM scratch.
# ---------------------------------------------------------------------------
def resmlp_streamed_kernel(x_ref, w_in_ref, stem_aff_ref,
                           w_res_ref, res_aff_ref,
                           w_out_ref, b_out_ref, o_ref, h_ref):
    d = pl.program_id(1)
    n_steps = pl.num_programs(1)
    L = w_res_ref.shape[0]

    @pl.when(d == 0)
    def _stem():
        # TODO(synk): for very large input_size on v7x (64 MiB VMEM), keep x/w_in in
        # pl.ANY and manual-DMA K-chunks here instead of holding full blocks resident.
        stem_aff = stem_aff_ref[...]
        h = jnp.dot(x_ref[...], w_in_ref[...], preferred_element_type=jnp.float32)
        h = jnp.maximum(h + stem_aff[0:1], 0.0)
        h_ref[...] = _layernorm(h, stem_aff[1:2], stem_aff[2:3])

    # L residual blocks for this grid step (bias/LN affine indexed from the resident pack).
    def body(l, h):
        return _res_block(h, w_res_ref[l], res_aff_ref[d * L + l])
    h = lax.fori_loop(0, L, body, h_ref[...], unroll=True)
    h_ref[...] = h

    @pl.when(d == n_steps - 1)
    def _head():
        out = jnp.dot(h.astype(jnp.bfloat16), w_out_ref[...],
                      preferred_element_type=jnp.float32) + b_out_ref[...]
        o_ref[...] = out.astype(o_ref.dtype)


# ---------------------------------------------------------------------------
# Wrapper
# ---------------------------------------------------------------------------
def _vmem_capacity_bytes():
    try:
        return int(pltpu.get_tpu_info().vmem_capacity_bytes)
    except Exception:
        return 64 * 1024 * 1024        # assume the smallest (v7x per-TensorCore VMEM)


def _pick_tile_b(B):
    """Batch-tile rows: multiples of 16 (bf16 sublane packing); never pad a tiny batch
    to 128 rows; use 256 only when the batch still yields >=2 tiles (keeps v7x's second
    TensorCore busy) while filling the 256x256 MXU on v6e/v7x.  v5e (128x128 MXU) is
    equally well served by 128."""
    b16 = _round_up(B, 16)
    if b16 >= 512:
        return 256
    if b16 >= 128:
        return 128
    return b16


def resmlp_forward(x_nchw, params, *, tile_b=None, force_streaming_layers=None):
    B = x_nchw.shape[0]
    input_size, width = params["w_in"].shape
    output_size = params["w_out"].shape[1]
    n_res = params["w_res"].shape[0]
    # TODO(synk): special-case depth==1 (no residual blocks) with a stem+head-only kernel.
    assert n_res >= 1, "resmlp_forward requires depth >= 2"

    if tile_b is None:
        tile_b = _pick_tile_b(B)
    B_pad = _round_up(B, tile_b)
    nb = B_pad // tile_b
    out_pad = _round_up(output_size, LANE)              # lane-dense output stores

    # ---- operand packing: bf16 weights for the MXU, f32 bias/LayerNorm affine ----
    # ext.View(input_size): row-major flatten, same as torch .view(-1, input_size).
    x_flat = x_nchw.reshape(B, input_size).astype(jnp.bfloat16)
    x_flat = jnp.pad(x_flat, ((0, B_pad - B), (0, 0)))
    w_in = params["w_in"].astype(jnp.bfloat16)
    w_res = params["w_res"].astype(jnp.bfloat16)
    w_out = jnp.pad(params["w_out"], ((0, 0), (0, out_pad - output_size))).astype(jnp.bfloat16)
    b_out = jnp.pad(params["b_out"], ((0, 0), (0, out_pad - output_size)))
    stem_aff = jnp.concatenate([params["b_in"], params["g_in"], params["be_in"]], axis=0)    # (3, width)
    res_aff = jnp.concatenate([params["b_res"], params["g_res"], params["be_res"]], axis=1)  # (n_res, 3, width)

    # ---- VMEM accounting (Pallas double-buffers every BlockSpec operand) ----
    fixed_bytes = (2 * tile_b * input_size * BF16       # x tile
                   + 2 * input_size * width * BF16      # w_in
                   + 2 * 3 * width * F32                # stem affine
                   + 2 * width * out_pad * BF16         # w_out
                   + 2 * out_pad * F32                  # b_out
                   + 2 * tile_b * out_pad * F32)        # output tile
    resident_bytes = 2 * n_res * width * width * BF16 + 2 * n_res * 3 * width * F32
    budget = int(_vmem_capacity_bytes() * 0.70)         # headroom for compiler scratch

    use_resident = (force_streaming_layers is None
                    and fixed_bytes + resident_bytes <= budget)

    if use_resident:
        grid = (nb,)
        in_specs = [
            pl.BlockSpec((tile_b, input_size), lambda b: (b, 0)),
            pl.BlockSpec((input_size, width), lambda b: (0, 0)),
            pl.BlockSpec((3, width), lambda b: (0, 0)),
            pl.BlockSpec((n_res, width, width), lambda b: (0, 0, 0)),   # resident: fetched once
            pl.BlockSpec((n_res, 3, width), lambda b: (0, 0, 0)),       # resident: fetched once
            pl.BlockSpec((width, out_pad), lambda b: (0, 0)),
            pl.BlockSpec((1, out_pad), lambda b: (0, 0)),
        ]
        out_spec = pl.BlockSpec((tile_b, out_pad), lambda b: (b, 0))
        scratch_shapes = []
        kernel = resmlp_resident_kernel
        dim_sem = ("parallel",)
        vmem_need = fixed_bytes + resident_bytes
        res_weight_reads = 1                              # residual weights read from HBM once
    else:
        # Stream L layers per grid step, sized to the budget (double-buffered blocks).
        per_layer = 2 * width * width * BF16
        aff_bytes = 2 * n_res * 3 * width * F32 + tile_b * width * F32
        if force_streaming_layers is not None:
            L = int(force_streaming_layers)
        else:
            L = (budget - fixed_bytes - aff_bytes) // per_layer
        L = max(1, min(int(L), n_res))
        n_steps = pl.cdiv(n_res, L)
        n_res_pad = n_steps * L
        if n_res_pad != n_res:
            # Pad with exact-identity layers: w=0, b=0, gamma=1, beta=0  =>  block output z == 0.
            pad = n_res_pad - n_res
            w_res = jnp.concatenate(
                [w_res, jnp.zeros((pad, width, width), w_res.dtype)], axis=0)
            pad_aff = jnp.concatenate(
                [jnp.zeros((pad, 1, width), jnp.float32),
                 jnp.ones((pad, 1, width), jnp.float32),
                 jnp.zeros((pad, 1, width), jnp.float32)], axis=1)
            res_aff = jnp.concatenate([res_aff, pad_aff], axis=0)
        grid = (nb, n_steps)
        in_specs = [
            pl.BlockSpec((tile_b, input_size), lambda b, d: (b, 0)),
            pl.BlockSpec((input_size, width), lambda b, d: (0, 0)),
            pl.BlockSpec((3, width), lambda b, d: (0, 0)),
            pl.BlockSpec((L, width, width), lambda b, d: (d, 0, 0)),      # streamed per step
            pl.BlockSpec((n_res_pad, 3, width), lambda b, d: (0, 0, 0)),  # bias/LN affine resident
            pl.BlockSpec((width, out_pad), lambda b, d: (0, 0)),
            pl.BlockSpec((1, out_pad), lambda b, d: (0, 0)),
        ]
        out_spec = pl.BlockSpec((tile_b, out_pad), lambda b, d: (b, 0))
        scratch_shapes = [pltpu.VMEM((tile_b, width), jnp.float32)]       # persistent hidden state
        kernel = resmlp_streamed_kernel
        dim_sem = ("parallel", "arbitrary")
        vmem_need = (fixed_bytes + 2 * L * width * width * BF16
                     + 2 * n_res_pad * 3 * width * F32 + tile_b * width * F32)
        res_weight_reads = nb                             # re-streamed once per batch tile

    vmem_limit = int(min(max(vmem_need * 1.25 + (4 << 20), 16 << 20),
                         _vmem_capacity_bytes() * 0.9))

    # Cost estimate (resident weights counted once, not nb x).
    flops = 2 * B_pad * (input_size * width + n_res * width * width + width * out_pad)
    res_w_bytes = n_res * width * width * BF16
    other_w_bytes = (input_size * width + width * out_pad) * BF16
    io_bytes = B_pad * input_size * BF16 + B_pad * out_pad * F32
    small_bytes = (3 * width + n_res * 3 * width + out_pad) * F32
    cost = pl.CostEstimate(
        flops=int(flops),
        transcendentals=int(B_pad * (n_res + 1)),         # one rsqrt per LayerNorm row
        bytes_accessed=int(res_weight_reads * res_w_bytes + other_w_bytes
                           + io_bytes + small_bytes),
    )

    out_padded = pl.pallas_call(
        kernel,
        out_shape=jax.ShapeDtypeStruct((B_pad, out_pad), jnp.float32),
        grid_spec=pltpu.PrefetchScalarGridSpec(
            num_scalar_prefetch=0,
            grid=grid,
            in_specs=in_specs,
            out_specs=out_spec,
            scratch_shapes=scratch_shapes,
        ),
        compiler_params=pltpu.CompilerParams(
            dimension_semantics=dim_sem,
            vmem_limit_bytes=vmem_limit,
        ),
        cost_estimate=cost,
    )(x_flat, w_in, stem_aff, w_res, res_aff, w_out, b_out)

    return out_padded[:B, :output_size]


# ---------------------------------------------------------------------------
# Parameter init (PyTorch nn.Linear defaults) and pure-JAX reference
# ---------------------------------------------------------------------------
def init_params(key, input_size, width, output_size, depth):
    """U(-1/sqrt(fan_in), 1/sqrt(fan_in)) init; weights stored (in, out) so the kernel
    computes x @ W directly.  LayerNorm affine = (weight=1, bias=0)."""
    keys = jax.random.split(key, 3)

    def lin(k, fan_in, fan_out):
        kw, kb = jax.random.split(k)
        bound = 1.0 / jnp.sqrt(fan_in)
        w = jax.random.uniform(kw, (fan_in, fan_out), jnp.float32, -bound, bound)
        b = jax.random.uniform(kb, (1, fan_out), jnp.float32, -bound, bound)
        return w, b

    n_res = depth - 1
    w_in, b_in = lin(keys[0], input_size, width)
    w_out, b_out = lin(keys[1], width, output_size)

    res_ws, res_bs = [], []
    res_keys = jax.random.split(keys[2], max(n_res, 1))
    for i in range(n_res):
        w, b = lin(res_keys[i], width, width)
        res_ws.append(w)
        res_bs.append(b)
    w_res = jnp.stack(res_ws) if n_res else jnp.zeros((0, width, width), jnp.float32)
    b_res = jnp.stack(res_bs) if n_res else jnp.zeros((0, 1, width), jnp.float32)

    g_in = jnp.ones((1, width), jnp.float32)
    be_in = jnp.zeros((1, width), jnp.float32)
    g_res = jnp.ones((n_res, 1, width), jnp.float32)
    be_res = jnp.zeros((n_res, 1, width), jnp.float32)

    return dict(w_in=w_in, b_in=b_in, g_in=g_in, be_in=be_in,
                w_res=w_res, b_res=b_res, g_res=g_res, be_res=be_res,
                w_out=w_out, b_out=b_out)


def resmlp_reference(x_nchw, params):
    """Pure-JAX reference mirroring the kernel's bf16-matmul / f32-accumulate math."""
    B = x_nchw.shape[0]

    def mm(a, w):
        return jnp.dot(a.astype(jnp.bfloat16), w.astype(jnp.bfloat16),
                       preferred_element_type=jnp.float32)

    h = x_nchw.reshape(B, -1).astype(jnp.float32)
    h = jnp.maximum(mm(h, params["w_in"]) + params["b_in"], 0.0)
    h = _layernorm(h, params["g_in"], params["be_in"])
    for i in range(params["w_res"].shape[0]):
        z = jnp.maximum(mm(h, params["w_res"][i]) + params["b_res"][i], 0.0)
        z = _layernorm(z, params["g_res"][i], params["be_res"][i])
        h = h + z
    return mm(h, params["w_out"]) + params["b_out"]


if __name__ == "__main__":
    # Small shapes consistent with the module: B=2, C=1, H=W=16 -> input_size=256
    B, C, H, W = 2, 1, 16, 16
    input_size = C * H * W
    width = 128
    output_size = 10
    depth = 4

    key = jax.random.PRNGKey(0)
    kx, kp = jax.random.split(key)
    x = jax.random.normal(kx, (B, C, H, W), jnp.float32)
    params = init_params(kp, input_size, width, output_size, depth)

    ref = resmlp_reference(x, params)

    # Resident-weights fast path (residual weight stack fits VMEM at these shapes).
    out = jax.block_until_ready(resmlp_forward(x, params))
    assert out.shape == (B, output_size)
    assert jnp.allclose(out, ref, atol=2e-2, rtol=2e-2), "resident path mismatch vs. reference"

    # Also exercise the layer-blocked streaming fallback (the path large v7x configs take),
    # including the identity-layer padding (n_res=3 padded to 4 with L=2).
    out_s = jax.block_until_ready(resmlp_forward(x, params, force_streaming_layers=2))
    assert jnp.allclose(out_s, ref, atol=2e-2, rtol=2e-2), "streamed path mismatch vs. reference"

    print("KERNEL_OK")
</pallas_src>

<mosaic_0001>
module attributes {stable_mosaic.version = 11 : i64} {
  func.func @resmlp_resident_kernel(%arg0: i32, %arg1: memref<16x256xbf16, #tpu.memory_space<vmem>>, %arg2: memref<256x128xbf16, #tpu.memory_space<vmem>>, %arg3: memref<3x128xf32, #tpu.memory_space<vmem>>, %arg4: memref<3x128x128xbf16, #tpu.memory_space<vmem>>, %arg5: memref<3x3x128xf32, #tpu.memory_space<vmem>>, %arg6: memref<128x128xbf16, #tpu.memory_space<vmem>>, %arg7: memref<1x128xf32, #tpu.memory_space<vmem>>, %arg8: memref<16x128xf32, #tpu.memory_space<vmem>>) attributes {dimension_semantics = [#tpu.dimension_semantics<parallel>], iteration_bounds = array<i64: 1>, scalar_prefetch = 0 : i64, scratch_operands = 0 : i64, tpu.core_type = #tpu.core_type<tc>, window_params = [{transform_indices = @transform_0, window_bounds = array<i64: 16, 256>}, {pipeline_mode = #tpu.pipeline_mode<synchronous>, transform_indices = @transform_1, window_bounds = array<i64: 256, 128>}, {pipeline_mode = #tpu.pipeline_mode<synchronous>, transform_indices = @transform_2, window_bounds = array<i64: 3, 128>}, {pipeline_mode = #tpu.pipeline_mode<synchronous>, transform_indices = @transform_3, window_bounds = array<i64: 3, 128, 128>}, {pipeline_mode = #tpu.pipeline_mode<synchronous>, transform_indices = @transform_4, window_bounds = array<i64: 3, 3, 128>}, {pipeline_mode = #tpu.pipeline_mode<synchronous>, transform_indices = @transform_5, window_bounds = array<i64: 128, 128>}, {pipeline_mode = #tpu.pipeline_mode<synchronous>, transform_indices = @transform_6, window_bounds = array<i64: 1, 128>}, {transform_indices = @transform_7, window_bounds = array<i64: 16, 128>}]} {
    %c0 = arith.constant 0 : index
    %c0_0 = arith.constant 0 : index
    %0 = vector.load %arg3[%c0, %c0_0] : memref<3x128xf32, #tpu.memory_space<vmem>>, vector<3x128xf32>
    %c0_1 = arith.constant 0 : index
    %c0_2 = arith.constant 0 : index
    %1 = vector.load %arg1[%c0_1, %c0_2] : memref<16x256xbf16, #tpu.memory_space<vmem>>, vector<16x256xbf16>
    %c0_3 = arith.constant 0 : index
    %c0_4 = arith.constant 0 : index
    %2 = vector.load %arg2[%c0_3, %c0_4] : memref<256x128xbf16, #tpu.memory_space<vmem>>, vector<256x128xbf16>
    %cst = arith.constant dense<0.000000e+00> : vector<16x128xf32>
    %3 = tpu.matmul %1, %2, %cst {dimension_numbers = #tpu.dot_dimension_numbers<[1], [0], [0], [1], [0, 0, 1, 1], [], []>} : vector<16x256xbf16>, vector<256x128xbf16>, vector<16x128xf32> -> vector<16x128xf32>
    %4 = vector.extract_strided_slice %0 {offsets = [0, 0], sizes = [1, 128], strides = [1, 1]} : vector<3x128xf32> to vector<1x128xf32>
    %5 = vector.broadcast %4 : vector<1x128xf32> to vector<16x128xf32>
    %6 = arith.addf %3, %5 : vector<16x128xf32>
    %cst_5 = arith.constant 0.000000e+00 : f32
    %7 = vector.broadcast %cst_5 : f32 to vector<16x128xf32>
    %8 = arith.maximumf %6, %7 : vector<16x128xf32>
    %9 = vector.extract_strided_slice %0 {offsets = [1, 0], sizes = [1, 128], strides = [1, 1]} : vector<3x128xf32> to vector<1x128xf32>
    %10 = vector.extract_strided_slice %0 {offsets = [2, 0], sizes = [1, 128], strides = [1, 1]} : vector<3x128xf32> to vector<1x128xf32>
    %cst_6 = arith.constant dense<0.000000e+00> : vector<16xf32>
    %11 = vector.multi_reduction <add>, %8, %cst_6 [1] : vector<16x128xf32> to vector<16xf32>
    %12 = vector.shape_cast %11 : vector<16xf32> to vector<16x1xf32>
    %cst_7 = arith.constant 1.280000e+02 : f32
    %13 = vector.broadcast %cst_7 : f32 to vector<16x1xf32>
    %14 = arith.divf %12, %13 : vector<16x1xf32>
    %15 = arith.mulf %8, %8 : vector<16x128xf32>
    %cst_8 = arith.constant dense<0.000000e+00> : vector<16xf32>
    %16 = vector.multi_reduction <add>, %15, %cst_8 [1] : vector<16x128xf32> to vector<16xf32>
    %17 = vector.shape_cast %16 : vector<16xf32> to vector<16x1xf32>
    %cst_9 = arith.constant 1.280000e+02 : f32
    %18 = vector.broadcast %cst_9 : f32 to vector<16x1xf32>
    %19 = arith.divf %17, %18 : vector<16x1xf32>
    %20 = arith.mulf %14, %14 : vector<16x1xf32>
    %21 = arith.subf %19, %20 : vector<16x1xf32>
    %22 = vector.broadcast %14 : vector<16x1xf32> to vector<16x128xf32>
    %23 = arith.subf %8, %22 : vector<16x128xf32>
    %cst_10 = arith.constant 9.99999974E-6 : f32
    %24 = vector.broadcast %cst_10 : f32 to vector<16x1xf32>
    %25 = arith.addf %21, %24 : vector<16x1xf32>
    %26 = math.rsqrt %25 : vector<16x1xf32>
    %27 = vector.broadcast %26 : vector<16x1xf32> to vector<16x128xf32>
    %28 = arith.mulf %23, %27 : vector<16x128xf32>
    %29 = vector.broadcast %9 : vector<1x128xf32> to vector<16x128xf32>
    %30 = arith.mulf %28, %29 : vector<16x128xf32>
    %31 = vector.broadcast %10 : vector<1x128xf32> to vector<16x128xf32>
    %32 = arith.addf %30, %31 : vector<16x128xf32>
    %c0_i32 = arith.constant 0 : i32
    %33 = arith.index_cast %c0_i32 : i32 to index
    %c0_11 = arith.constant 0 : index
    %c0_12 = arith.constant 0 : index
    %34 = vector.load %arg4[%33, %c0_11, %c0_12] : memref<3x128x128xbf16, #tpu.memory_space<vmem>>, vector<1x128x128xbf16>
    %35 = vector.shape_cast %34 : vector<1x128x128xbf16> to vector<128x128xbf16>
    %36 = arith.index_cast %c0_i32 : i32 to index
    %c0_13 = arith.constant 0 : index
    %c0_14 = arith.constant 0 : index
    %37 = vector.load %arg5[%36, %c0_13, %c0_14] : memref<3x3x128xf32, #tpu.memory_space<vmem>>, vector<1x3x128xf32>
    %38 = vector.shape_cast %37 : vector<1x3x128xf32> to vector<3x128xf32>
    %39 = arith.truncf %32 : vector<16x128xf32> to vector<16x128xbf16>
    %cst_15 = arith.constant dense<0.000000e+00> : vector<16x128xf32>
    %40 = tpu.matmul %39, %35, %cst_15 {dimension_numbers = #tpu.dot_dimension_numbers<[1], [0], [0], [1], [0, 0, 1, 1], [], []>} : vector<16x128xbf16>, vector<128x128xbf16>, vector<16x128xf32> -> vector<16x128xf32>
    %41 = vector.extract_strided_slice %38 {offsets = [0, 0], sizes = [1, 128], strides = [1, 1]} : vector<3x128xf32> to vector<1x128xf32>
    %42 = vector.broadcast %41 : vector<1x128xf32> to vector<16x128xf32>
    %43 = arith.addf %40, %42 : vector<16x128xf32>
    %cst_16 = arith.constant 0.000000e+00 : f32
    %44 = vector.broadcast %cst_16 : f32 to vector<16x128xf32>
    %45 = arith.maximumf %43, %44 : vector<16x128xf32>
    %46 = vector.extract_strided_slice %38 {offsets = [1, 0], sizes = [1, 128], strides = [1, 1]} : vector<3x128xf32> to vector<1x128xf32>
    %47 = vector.extract_strided_slice %38 {offsets = [2, 0], sizes = [1, 128], strides = [1, 1]} : vector<3x128xf32> to vector<1x128xf32>
    %cst_17 = arith.constant dense<0.000000e+00> : vector<16xf32>
    %48 = vector.multi_reduction <add>, %45, %cst_17 [1] : vector<16x128xf32> to vector<16xf32>
    %49 = vector.shape_cast %48 : vector<16xf32> to vector<16x1xf32>
    %cst_18 = arith.constant 1.280000e+02 : f32
    %50 = vector.broadcast %cst_18 : f32 to vector<16x1xf32>
    %51 = arith.divf %49, %50 : vector<16x1xf32>
    %52 = arith.mulf %45, %45 : vector<16x128xf32>
    %cst_19 = arith.constant dense<0.000000e+00> : vector<16xf32>
    %53 = vector.multi_reduction <add>, %52, %cst_19 [1] : vector<16x128xf32> to vector<16xf32>
    %54 = vector.shape_cast %53 : vector<16xf32> to vector<16x1xf32>
    %cst_20 = arith.constant 1.280000e+02 : f32
    %55 = vector.broadcast %cst_20 : f32 to vector<16x1xf32>
    %56 = arith.divf %54, %55 : vector<16x1xf32>
    %57 = arith.mulf %51, %51 : vector<16x1xf32>
    %58 = arith.subf %56, %57 : vector<16x1xf32>
    %59 = vector.broadcast %51 : vector<16x1xf32> to vector<16x128xf32>
    %60 = arith.subf %45, %59 : vector<16x128xf32>
    %cst_21 = arith.constant 9.99999974E-6 : f32
    %61 = vector.broadcast %cst_21 : f32 to vector<16x1xf32>
    %62 = arith.addf %58, %61 : vector<16x1xf32>
    %63 = math.rsqrt %62 : vector<16x1xf32>
    %64 = vector.broadcast %63 : vector<16x1xf32> to vector<16x128xf32>
    %65 = arith.mulf %60, %64 : vector<16x128xf32>
    %66 = vector.broadcast %46 : vector<1x128xf32> to vector<16x128xf32>
    %67 = arith.mulf %65, %66 : vector<16x128xf32>
    %68 = vector.broadcast %47 : vector<1x128xf32> to vector<16x128xf32>
    %69 = arith.addf %67, %68 : vector<16x128xf32>
    %70 = arith.addf %32, %69 : vector<16x128xf32>
    %c1_i32 = arith.constant 1 : i32
    %71 = arith.index_cast %c1_i32 : i32 to index
    %c0_22 = arith.constant 0 : index
    %c0_23 = arith.constant 0 : index
    %72 = vector.load %arg4[%71, %c0_22, %c0_23] : memref<3x128x128xbf16, #tpu.memory_space<vmem>>, vector<1x128x128xbf16>
    %73 = vector.shape_cast %72 : vector<1x128x128xbf16> to vector<128x128xbf16>
    %74 = arith.index_cast %c1_i32 : i32 to index
    %c0_24 = arith.constant 0 : index
    %c0_25 = arith.constant 0 : index
    %75 = vector.load %arg5[%74, %c0_24, %c0_25] : memref<3x3x128xf32, #tpu.memory_space<vmem>>, vector<1x3x128xf32>
    %76 = vector.shape_cast %75 : vector<1x3x128xf32> to vector<3x128xf32>
    %77 = arith.truncf %70 : vector<16x128xf32> to vector<16x128xbf16>
    %cst_26 = arith.constant dense<0.000000e+00> : vector<16x128xf32>
    %78 = tpu.matmul %77, %73, %cst_26 {dimension_numbers = #tpu.dot_dimension_numbers<[1], [0], [0], [1], [0, 0, 1, 1], [], []>} : vector<16x128xbf16>, vector<128x128xbf16>, vector<16x128xf32> -> vector<16x128xf32>
    %79 = vector.extract_strided_slice %76 {offsets = [0, 0], sizes = [1, 128], strides = [1, 1]} : vector<3x128xf32> to vector<1x128xf32>
    %80 = vector.broadcast %79 : vector<1x128xf32> to vector<16x128xf32>
    %81 = arith.addf %78, %80 : vector<16x128xf32>
    %cst_27 = arith.constant 0.000000e+00 : f32
    %82 = vector.broadcast %cst_27 : f32 to vector<16x128xf32>
    %83 = arith.maximumf %81, %82 : vector<16x128xf32>
    %84 = vector.extract_strided_slice %76 {offsets = [1, 0], sizes = [1, 128], strides = [1, 1]} : vector<3x128xf32> to vector<1x128xf32>
    %85 = vector.extract_strided_slice %76 {offsets = [2, 0], sizes = [1, 128], strides = [1, 1]} : vector<3x128xf32> to vector<1x128xf32>
    %cst_28 = arith.constant dense<0.000000e+00> : vector<16xf32>
    %86 = vector.multi_reduction <add>, %83, %cst_28 [1] : vector<16x128xf32> to vector<16xf32>
    %87 = vector.shape_cast %86 : vector<16xf32> to vector<16x1xf32>
    %cst_29 = arith.constant 1.280000e+02 : f32
    %88 = vector.broadcast %cst_29 : f32 to vector<16x1xf32>
    %89 = arith.divf %87, %88 : vector<16x1xf32>
    %90 = arith.mulf %83, %83 : vector<16x128xf32>
    %cst_30 = arith.constant dense<0.000000e+00> : vector<16xf32>
    %91 = vector.multi_reduction <add>, %90, %cst_30 [1] : vector<16x128xf32> to vector<16xf32>
    %92 = vector.shape_cast %91 : vector<16xf32> to vector<16x1xf32>
    %cst_31 = arith.constant 1.280000e+02 : f32
    %93 = vector.broadcast %cst_31 : f32 to vector<16x1xf32>
    %94 = arith.divf %92, %93 : vector<16x1xf32>
    %95 = arith.mulf %89, %89 : vector<16x1xf32>
    %96 = arith.subf %94, %95 : vector<16x1xf32>
    %97 = vector.broadcast %89 : vector<16x1xf32> to vector<16x128xf32>
    %98 = arith.subf %83, %97 : vector<16x128xf32>
    %cst_32 = arith.constant 9.99999974E-6 : f32
    %99 = vector.broadcast %cst_32 : f32 to vector<16x1xf32>
    %100 = arith.addf %96, %99 : vector<16x1xf32>
    %101 = math.rsqrt %100 : vector<16x1xf32>
    %102 = vector.broadcast %101 : vector<16x1xf32> to vector<16x128xf32>
    %103 = arith.mulf %98, %102 : vector<16x128xf32>
    %104 = vector.broadcast %84 : vector<1x128xf32> to vector<16x128xf32>
    %105 = arith.mulf %103, %104 : vector<16x128xf32>
    %106 = vector.broadcast %85 : vector<1x128xf32> to vector<16x128xf32>
    %107 = arith.addf %105, %106 : vector<16x128xf32>
    %108 = arith.addf %70, %107 : vector<16x128xf32>
    %c2_i32 = arith.constant 2 : i32
    %109 = arith.index_cast %c2_i32 : i32 to index
    %c0_33 = arith.constant 0 : index
    %c0_34 = arith.constant 0 : index
    %110 = vector.load %arg4[%109, %c0_33, %c0_34] : memref<3x128x128xbf16, #tpu.memory_space<vmem>>, vector<1x128x128xbf16>
    %111 = vector.shape_cast %110 : vector<1x128x128xbf16> to vector<128x128xbf16>
    %112 = arith.index_cast %c2_i32 : i32 to index
    %c0_35 = arith.constant 0 : index
    %c0_36 = arith.constant 0 : index
    %113 = vector.load %arg5[%112, %c0_35, %c0_36] : memref<3x3x128xf32, #tpu.memory_space<vmem>>, vector<1x3x128xf32>
    %114 = vector.shape_cast %113 : vector<1x3x128xf32> to vector<3x128xf32>
    %115 = arith.truncf %108 : vector<16x128xf32> to vector<16x128xbf16>
    %cst_37 = arith.constant dense<0.000000e+00> : vector<16x128xf32>
    %116 = tpu.matmul %115, %111, %cst_37 {dimension_numbers = #tpu.dot_dimension_numbers<[1], [0], [0], [1], [0, 0, 1, 1], [], []>} : vector<16x128xbf16>, vector<128x128xbf16>, vector<16x128xf32> -> vector<16x128xf32>
    %117 = vector.extract_strided_slice %114 {offsets = [0, 0], sizes = [1, 128], strides = [1, 1]} : vector<3x128xf32> to vector<1x128xf32>
    %118 = vector.broadcast %117 : vector<1x128xf32> to vector<16x128xf32>
    %119 = arith.addf %116, %118 : vector<16x128xf32>
    %cst_38 = arith.constant 0.000000e+00 : f32
    %120 = vector.broadcast %cst_38 : f32 to vector<16x128xf32>
    %121 = arith.maximumf %119, %120 : vector<16x128xf32>
    %122 = vector.extract_strided_slice %114 {offsets = [1, 0], sizes = [1, 128], strides = [1, 1]} : vector<3x128xf32> to vector<1x128xf32>
    %123 = vector.extract_strided_slice %114 {offsets = [2, 0], sizes = [1, 128], strides = [1, 1]} : vector<3x128xf32> to vector<1x128xf32>
    %cst_39 = arith.constant dense<0.000000e+00> : vector<16xf32>
    %124 = vector.multi_reduction <add>, %121, %cst_39 [1] : vector<16x128xf32> to vector<16xf32>
    %125 = vector.shape_cast %124 : vector<16xf32> to vector<16x1xf32>
    %cst_40 = arith.constant 1.280000e+02 : f32
    %126 = vector.broadcast %cst_40 : f32 to vector<16x1xf32>
    %127 = arith.divf %125, %126 : vector<16x1xf32>
    %128 = arith.mulf %121, %121 : vector<16x128xf32>
    %cst_41 = arith.constant dense<0.000000e+00> : vector<16xf32>
    %129 = vector.multi_reduction <add>, %128, %cst_41 [1] : vector<16x128xf32> to vector<16xf32>
    %130 = vector.shape_cast %129 : vector<16xf32> to vector<16x1xf32>
    %cst_42 = arith.constant 1.280000e+02 : f32
    %131 = vector.broadcast %cst_42 : f32 to vector<16x1xf32>
    %132 = arith.divf %130, %131 : vector<16x1xf32>
    %133 = arith.mulf %127, %127 : vector<16x1xf32>
    %134 = arith.subf %132, %133 : vector<16x1xf32>
    %135 = vector.broadcast %127 : vector<16x1xf32> to vector<16x128xf32>
    %136 = arith.subf %121, %135 : vector<16x128xf32>
    %cst_43 = arith.constant 9.99999974E-6 : f32
    %137 = vector.broadcast %cst_43 : f32 to vector<16x1xf32>
    %138 = arith.addf %134, %137 : vector<16x1xf32>
    %139 = math.rsqrt %138 : vector<16x1xf32>
    %140 = vector.broadcast %139 : vector<16x1xf32> to vector<16x128xf32>
    %141 = arith.mulf %136, %140 : vector<16x128xf32>
    %142 = vector.broadcast %122 : vector<1x128xf32> to vector<16x128xf32>
    %143 = arith.mulf %141, %142 : vector<16x128xf32>
    %144 = vector.broadcast %123 : vector<1x128xf32> to vector<16x128xf32>
    %145 = arith.addf %143, %144 : vector<16x128xf32>
    %146 = arith.addf %108, %145 : vector<16x128xf32>
    %c3_i32 = arith.constant 3 : i32
    %147 = arith.truncf %146 : vector<16x128xf32> to vector<16x128xbf16>
    %c0_44 = arith.constant 0 : index
    %c0_45 = arith.constant 0 : index
    %148 = vector.load %arg6[%c0_44, %c0_45] : memref<128x128xbf16, #tpu.memory_space<vmem>>, vector<128x128xbf16>
    %cst_46 = arith.constant dense<0.000000e+00> : vector<16x128xf32>
    %149 = tpu.matmul %147, %148, %cst_46 {dimension_numbers = #tpu.dot_dimension_numbers<[1], [0], [0], [1], [0, 0, 1, 1], [], []>} : vector<16x128xbf16>, vector<128x128xbf16>, vector<16x128xf32> -> vector<16x128xf32>
    %c0_47 = arith.constant 0 : index
    %c0_48 = arith.constant 0 : index
    %150 = vector.load %arg7[%c0_47, %c0_48] : memref<1x128xf32, #tpu.memory_space<vmem>>, vector<1x128xf32>
    %151 = vector.broadcast %150 : vector<1x128xf32> to vector<16x128xf32>
    %152 = arith.addf %149, %151 : vector<16x128xf32>
    %c0_49 = arith.constant 0 : index
    %c0_50 = arith.constant 0 : index
    %153 = vector.load %arg8[%c0_49, %c0_50] : memref<16x128xf32, #tpu.memory_space<vmem>>, vector<16x128xf32>
    tpu.vector_store %arg8[%c0_49, %c0_50], %152 {strides = array<i32>} : memref<16x128xf32, #tpu.memory_space<vmem>>, vector<16x128xf32>,
    return
  }
  func.func @transform_0(%arg0: i32) -> (i32, i32) {
    %c0_i32 = arith.constant 0 : i32
    %c0_i32_0 = arith.constant 0 : i32
    return %arg0, %c0_i32 : i32, i32
  }
  func.func @transform_1(%arg0: i32) -> (i32, i32) {
    %c0_i32 = arith.constant 0 : i32
    %c0_i32_0 = arith.constant 0 : i32
    %c0_i32_1 = arith.constant 0 : i32
    return %c0_i32, %c0_i32_0 : i32, i32
  }
  func.func @transform_2(%arg0: i32) -> (i32, i32) {
    %c0_i32 = arith.constant 0 : i32
    %c0_i32_0 = arith.constant 0 : i32
    %c0_i32_1 = arith.constant 0 : i32
    return %c0_i32, %c0_i32_0 : i32, i32
  }
  func.func @transform_3(%arg0: i32) -> (i32, i32, i32) {
    %c0_i32 = arith.constant 0 : i32
    %c0_i32_0 = arith.constant 0 : i32
    %c0_i32_1 = arith.constant 0 : i32
    %c0_i32_2 = arith.constant 0 : i32
    return %c0_i32, %c0_i32_0, %c0_i32_1 : i32, i32, i32
  }
  func.func @transform_4(%arg0: i32) -> (i32, i32, i32) {
    %c0_i32 = arith.constant 0 : i32
    %c0_i32_0 = arith.constant 0 : i32
    %c0_i32_1 = arith.constant 0 : i32
    %c0_i32_2 = arith.constant 0 : i32
    return %c0_i32, %c0_i32_0, %c0_i32_1 : i32, i32, i32
  }
  func.func @transform_5(%arg0: i32) -> (i32, i32) {
    %c0_i32 = arith.constant 0 : i32
    %c0_i32_0 = arith.constant 0 : i32
    %c0_i32_1 = arith.constant 0 : i32
    return %c0_i32, %c0_i32_0 : i32, i32
  }
  func.func @transform_6(%arg0: i32) -> (i32, i32) {
    %c0_i32 = arith.constant 0 : i32
    %c0_i32_0 = arith.constant 0 : i32
    %c0_i32_1 = arith.constant 0 : i32
    return %c0_i32, %c0_i32_0 : i32, i32
  }
  func.func @transform_7(%arg0: i32) -> (i32, i32) {
    %c0_i32 = arith.constant 0 : i32
    %c0_i32_0 = arith.constant 0 : i32
    return %arg0, %c0_i32 : i32, i32
  }
}

</mosaic_0001>

<bundles_post_ra>
// kernel: tpu_custom_call.1
= control target key start
LH: loop header
LB: loop body
LE: loop exit
PB: predicated region body
PF: predicated region fallthrough
CT: control target
= control target key end

     0   :  { %12 = vsyncpa [#allocation3], 0  ;;  %s1571_s0 = inlined_call_operand.hbm [shape: bf16[16,256], index: 0, kind: input, shape index: {}]   ;;  %s1572_s1 = inlined_call_operand.hbm [shape: bf16[256,128], index: 1, kind: input, shape index: {}]   ;;  %s1573_s2 = inlined_call_operand.hbm [shape: f32[3,128], index: 2, kind: input, shape index: {}]   ;;  %s1574_s3 = inlined_call_operand.hbm [shape: bf16[3,128,128], index: 3, kind: input, shape index: {}]   ;;  %s1575_s4 = inlined_call_operand.vmem [shape: f32[3,3,128], index: 4, kind: input, shape index: {}]   ;;  %s1576_s5 = inlined_call_operand.hbm [shape: bf16[128,128], index: 5, kind: input, shape index: {}]   ;;  %s1577_s6 = inlined_call_operand.vmem [shape: f32[1,128], index: 6, kind: input, shape index: {}]   ;;  %s1578_s7 = inlined_call_operand.hbm [shape: f32[16,128], index: 7, kind: output, shape index: {}]  }
   0x1   :  { %13 = vsyncpa [#allocation6], 0 }
   0x2   :  { %14 = vsyncpa [#allocation9], 0 }
   0x3   :  { %15 = vsyncpa [#allocation4], 0  ;;  %s1328_s24 = smov [#allocation5]   ;;  %s1188_s28 = scalar_lea.hbm %s1572_s1, 2048 }
   0x4   :  { %s33_s25 = sshll.u32 %s1328_s24, 4  ;;  %p1189_p0 = scmp.ne.s32.totalorder %s1572_s1, %s1188_s28  ;;  %s34_s25 = int_to_ptr.vmem [resolvable:$true] %s33_s25 }
   0x5   :  { %p1192_p1 = scmp.lt.u32.totalorder %s1188_s28, %s1572_s1 }
   0x7   :  { %p1194_p2 = pnand %p1192_p1, %p1189_p0 }
   0x9   :  { %1197 = shalt.err (!%p1194_p2)
}
   0xa   :  { %s1198_s10 = scalar_lea.vmem %s34_s25, 2048  ;;  %p1203_p4 = scmp.lt.s32.totalorder %s34_s25, %s34_s25 }
   0xb   :  { %p1199_p3 = scmp.ne.s32.totalorder %s34_s25, %s1198_s10  ;;  %p1204_p5 = scmp.lt.s32.totalorder %s1198_s10, %s1198_s10 }
   0xd   :  { %p1205_p6 = por %p1204_p5, %p1203_p4 }
   0xf   :  { %p1206_p7 = pnand %p1205_p6, %p1199_p3 }
  0x11   :  { %1209 = shalt.err (!%p1206_p7)
}
  0x12   :  { %s1329_s11 = smov 64   ;;  %s1330_s12 = smov 4  }
  0x13   :  { %39 = dma.hbm_to_vmem [thread:$0]  %s1572_s1, 2048, %s34_s25, [#allocation6], %s1329_s11, %s1329_s11, %s1330_s12  }
  0x14   :  { %s1331_s15 = smov [#allocation8]   ;;  %s1332_s17 = smov [#allocation2]  }
  0x15   :  { %s55_s16 = sshll.u32 %s1331_s15, 4  ;;  %s21_s18 = sshll.u32 %s1332_s17, 4  ;;  %s56_s16 = int_to_ptr.vmem [resolvable:$true] %s55_s16  ;;  %s22_s18 = int_to_ptr.vmem [resolvable:$true] %s21_s18 }
  0x16   :  { %s1210_s21 = scalar_lea.hbm %s1574_s3, 3072 }
  0x17   :  { %p1211_p8 = scmp.ne.s32.totalorder %s1574_s3, %s1210_s21  ;;  %p1214_p9 = scmp.lt.u32.totalorder %s1210_s21, %s1574_s3 }
  0x19   :  { %p1216_p10 = pnand %p1214_p9, %p1211_p8 }
  0x1b   :  { %1219 = shalt.err (!%p1216_p10)
}
  0x1c   :  { %s1220_s1 = scalar_lea.vmem %s56_s16, 3072  ;;  %p1225_p12 = scmp.lt.s32.totalorder %s56_s16, %s56_s16 }
  0x1d   :  { %p1221_p11 = scmp.ne.s32.totalorder %s56_s16, %s1220_s1  ;;  %p1226_p13 = scmp.lt.s32.totalorder %s1220_s1, %s1220_s1 }
  0x1f   :  { %p1227_p0 = por %p1226_p13, %p1225_p12 }
  0x21   :  { %p1228_p1 = pnand %p1227_p0, %p1221_p11 }
  0x23   :  { %1231 = shalt.err (!%p1228_p1)
}
  0x24   :  { %61 = dma.hbm_to_vmem [thread:$0]  %s1574_s3, 3072, %s56_s16, [#allocation9], %s1329_s11, %s1329_s11, %s1330_s12  }
  0x25   :  { %s1232_s30 = scalar_lea.hbm %s1571_s0, 256 }
  0x26   :  { %p1233_p2 = scmp.ne.s32.totalorder %s1571_s0, %s1232_s30  ;;  %p1236_p3 = scmp.lt.u32.totalorder %s1232_s30, %s1571_s0 }
  0x28   :  { %p1238_p4 = pnand %p1236_p3, %p1233_p2 }
  0x2a   :  { %1241 = shalt.err (!%p1238_p4)
}
  0x2b   :  { %s1242_s14 = scalar_lea.vmem %s22_s18, 256  ;;  %p1247_p6 = scmp.lt.s32.totalorder %s22_s18, %s22_s18 }
  0x2c   :  { %p1243_p5 = scmp.ne.s32.totalorder %s22_s18, %s1242_s14  ;;  %p1248_p7 = scmp.lt.s32.totalorder %s1242_s14, %s1242_s14 }
  0x2e   :  { %p1249_p8 = por %p1248_p7, %p1247_p6 }
  0x30   :  { %p1250_p9 = pnand %p1249_p8, %p1243_p5 }
  0x32   :  { %1253 = shalt.err (!%p1250_p9)
}
  0x33   :  { %s1333_s3 = smov 128   ;;  %s1334_s15 = smov 8  }
  0x34   :  { %27 = dma.hbm_to_vmem [thread:$0]  %s1571_s0, 256, %s22_s18, [#allocation3], %s1333_s3, %s1333_s3, %s1334_s15  }
  0x35   :  { %s1335_s19 = smov [#allocation7]   ;;  %s1336_s21 = smov [#allocation10]  }
  0x36   :  { %s46_s20 = sshll.u32 %s1335_s19, 4  ;;  %s69_s22 = sshll.u32 %s1336_s21, 4  ;;  %s47_s20 = int_to_ptr.vmem [resolvable:$true] %s46_s20  ;;  %s70_s22 = int_to_ptr.vmem [resolvable:$true] %s69_s22 }
  0x37   :  { %s1254_s26 = scalar_lea.hbm %s1573_s2, 64 }
  0x38   :  { %p1255_p10 = scmp.ne.s32.totalorder %s1573_s2, %s1254_s26  ;;  %p1258_p11 = scmp.lt.u32.totalorder %s1254_s26, %s1573_s2 }
  0x3a   :  { %p1260_p12 = pnand %p1258_p11, %p1255_p10 }
  0x3c   :  { %1263 = shalt.err (!%p1260_p12)
}
  0x3d   :  { %s1264_s0 = scalar_lea.vmem %s47_s20, 64  ;;  %p1269_p0 = scmp.lt.s32.totalorder %s47_s20, %s47_s20 }
  0x3e   :  { %p1265_p13 = scmp.ne.s32.totalorder %s47_s20, %s1264_s0  ;;  %p1270_p1 = scmp.lt.s32.totalorder %s1264_s0, %s1264_s0 }
  0x40   :  { %p1271_p2 = por %p1270_p1, %p1269_p0 }
  0x42   :  { %p1272_p3 = pnand %p1271_p2, %p1265_p13 }
  0x44   :  { %1275 = shalt.err (!%p1272_p3)
}
  0x45   :  { %49 = dma.hbm_to_vmem [thread:$0]  %s1573_s2, 64, %s47_s20, [#allocation6]  }
  0x46   :  { %s1276_s9 = scalar_lea.hbm %s1576_s5, 1024 }
  0x47   :  { %p1277_p4 = scmp.ne.s32.totalorder %s1576_s5, %s1276_s9  ;;  %p1280_p5 = scmp.lt.u32.totalorder %s1276_s9, %s1576_s5 }
  0x49   :  { %p1282_p6 = pnand %p1280_p5, %p1277_p4 }
  0x4b   :  { %1285 = shalt.err (!%p1282_p6)
}
  0x4c   :  { %s1286_s17 = scalar_lea.vmem %s70_s22, 1024  ;;  %p1291_p8 = scmp.lt.s32.totalorder %s70_s22, %s70_s22 }
  0x4d   :  { %p1287_p7 = scmp.ne.s32.totalorder %s70_s22, %s1286_s17  ;;  %p1292_p9 = scmp.lt.s32.totalorder %s1286_s17, %s1286_s17 }
  0x4f   :  { %p1293_p10 = por %p1292_p9, %p1291_p8 }
  0x51   :  { %p1294_p11 = pnand %p1293_p10, %p1287_p7 }
  0x53   :  { %1297 = shalt.err (!%p1294_p11)
}
  0x54   :  { %75 = dma.hbm_to_vmem [thread:$0]  %s1576_s5, 1024, %s70_s22, [#allocation9], %s1329_s11, %s1329_s11, %s1330_s12  }
  0x55   :  { %1320 = dma.done.wait [#allocation3], 256  }
  0x56   :  { %1321 = vsyncadd [#allocation3], 4294967040 }
  0x57   :  { %1322 = dma.done.wait [#allocation6], 2112  }
  0x58   :  { %1323 = vsyncadd [#allocation6], 4294965184 }
  0x59   :  { %1324 = dma.done.wait [#allocation9], 4096  }
  0x5a   :  { %1325 = vsyncadd [#allocation9], 4294963200  ;;  %v1121_v0 = vld [vmem:[#allocation5 + $0x40] sm:$0xff]   ;;  %v1123_v2 = vld [vmem:[#allocation5 + $0x48] sm:$0xff]   ;;  %v1337_v18 = vmov 0.0   ;;  %v129_v19 = vlaneseq  ;;  %vm1338_vm0 = vmmov 0  }
  0x5b   :  { %v1122_v1 = vld [vmem:[#allocation5] sm:$0xff]   ;;  %971 = vmatprep.subr.bf16.mxu0 %v1121_v0  ;;  %v1124_v3 = vld [vmem:[#allocation5 + $0x8] sm:$0xff]   ;;  %v1125_v4 = vld [vmem:[#allocation5 + $0x50] sm:$0xff]   ;;  %1029 = vmatprep.subr.bf16.mxu1 %v1337_v18  ;;  %s1339_s24 = smov [#allocation11]  }
  0x5c   :  { %972 = vmatpush3.bf16.msra.mxu0 %v1122_v1  ;;  %v1126_v5 = vld [vmem:[#allocation5 + $0x10] sm:$0xff]   ;;  %v1127_v6 = vld [vmem:[#allocation5 + $0x58] sm:$0xff]   ;;  %v1129_v8 = vld [vmem:[#allocation5 + $0x60] sm:$0xff]   ;;  %v1454_v20 = vshrl.u32 %v129_v19, 7  ;;  %1045 = vmatprep.mubr.msk.bf16.mxu1 %vm1338_vm0, %v1337_v18  ;;  %s904_s26 = sshll.u32 %s1339_s24, 4  ;;  %s905_s26 = int_to_ptr.vmem [resolvable:$true] %s904_s26 }
  0x5d   :  { %973 = vmatprep.subr.bf16.mxu0 %v1123_v2  ;;  %v1128_v7 = vld [vmem:[#allocation5 + $0x18] sm:$0xff]   ;;  %v1130_v9 = vld [vmem:[#allocation5 + $0x20] sm:$0xff]   ;;  %v1131_v10 = vld [vmem:[#allocation5 + $0x68] sm:$0xff]   ;;  %s1298_s1 = scalar_lea.vmem %s905_s26, 256  ;;  %p1303_p13 = scmp.lt.s32.totalorder %s905_s26, %s905_s26 }
  0x5e   :  { %v1132_v11 = vld [vmem:[#allocation5 + $0x28] sm:$0xff]   ;;  %v1139_v12 = vld [vmem:[#allocation2 + $0x4] ss:$8 sps:$4 sm:$0xff]   ;;  %v1137_v17 = vld [vmem:[#allocation2] ss:$8 sps:$4 sm:$0xff]   ;;  %v1457_v21 = vsub.s32 0, %v1454_v20  ;;  %p1299_p12 = scmp.ne.s32.totalorder %s905_s26, %s1298_s1  ;;  %p1304_p0 = scmp.lt.s32.totalorder %s1298_s1, %s1298_s1 }
  0x5f   :  { %v1133_v13 = vld [vmem:[#allocation5 + $0x70] sm:$0xff]   ;;  %271 = vmatprep.mubr.bf16.mxu0 %v1139_v12  ;;  %v1135_v15 = vld [vmem:[#allocation5 + $0x78] sm:$0xff]   ;;  %v1459_v22 = vld [vmem:[#allocation7] sm:$0x7]  ;;  %v1476_v58 = vsub.s32 1, %v1454_v20  ;;  %v1481_v63 = vsub.s32 2, %v1454_v20 }
  0x60   :  { %974 = vmatpush3.bf16.msra.mxu0 %v1124_v3  ;;  %v1134_v14 = vld [vmem:[#allocation5 + $0x30] sm:$0xff]   ;;  %v1136_v16 = vld [vmem:[#allocation5 + $0x38] sm:$0xff]   ;;  %v132_v24 = vrot.slane %v1459_v22, %v1457_v21  ;;  %v1140_v36 = vld [vmem:[#allocation8] sm:$0xff]   ;;  %p1305_p1 = por %p1304_p0, %p1303_p13 }
  0x61   :  { %975 = vmatprep.subr.bf16.mxu0 %v1125_v4  ;;  %1030 = vmatpush3.bf16.msra.mxu1 %v1140_v36  ;;  %v1141_v37 = vld [vmem:[#allocation8 + $0x8] sm:$0xff]   ;;  %v1142_v38 = vld [vmem:[#allocation8 + $0x10] sm:$0xff]   ;;  %v1143_v39 = vld [vmem:[#allocation8 + $0x18] sm:$0xff]   ;;  %v312_v61 = vrot.slane %v1459_v22, %v1476_v58  ;;  %v318_v4 = vrot.slane %v1459_v22, %v1481_v63 }
  0x62   :  { %1031 = vmatprep.subr.bf16.mxu1 %v1337_v18  ;;  %v1144_v40 = vld [vmem:[#allocation8 + $0x20] sm:$0xff]   ;;  %v1145_v41 = vld [vmem:[#allocation8 + $0x28] sm:$0xff]   ;;  %v1146_v42 = vld [vmem:[#allocation8 + $0x30] sm:$0xff]   ;;  %p1306_p2 = pnand %p1305_p1, %p1299_p12 }
  0x63   :  { %v1147_v43 = vld [vmem:[#allocation8 + $0x38] sm:$0xff]  }
  0x64   :  { %976 = vmatpush3.bf16.msra.mxu0 %v1126_v5 }
  0x65   :  { %977 = vmatprep.subr.bf16.mxu0 %v1127_v6  ;;  %1032 = vmatpush3.bf16.msra.mxu1 %v1141_v37 }
  0x66   :  { %1033 = vmatprep.subr.bf16.mxu1 %v1337_v18 }
  0x68   :  { %978 = vmatpush3.bf16.msra.mxu0 %v1128_v7 }
  0x69   :  { %979 = vmatprep.subr.bf16.mxu0 %v1129_v8  ;;  %1034 = vmatpush3.bf16.msra.mxu1 %v1142_v38 }
  0x6a   :  { %1035 = vmatprep.subr.bf16.mxu1 %v1337_v18 }
  0x6c   :  { %980 = vmatpush3.bf16.msra.mxu0 %v1130_v9  ;;  %v337_v9 = vld [vmem:[%s1575_s4] sm:$0x7] }
  0x6d   :  { %981 = vmatprep.subr.bf16.mxu0 %v1131_v10  ;;  %1036 = vmatpush3.bf16.msra.mxu1 %v1143_v39  ;;  %v342_v10 = vrot.slane %v337_v9, %v1457_v21 }
  0x6e   :  { %1037 = vmatprep.subr.bf16.mxu1 %v1337_v18 }
  0x70   :  { %982 = vmatpush3.bf16.msra.mxu0 %v1132_v11 }
  0x71   :  { %983 = vmatprep.subr.bf16.mxu0 %v1133_v13  ;;  %1038 = vmatpush3.bf16.msra.mxu1 %v1144_v40 }
  0x72   :  { %1039 = vmatprep.subr.bf16.mxu1 %v1337_v18 }
  0x74   :  { %984 = vmatpush3.bf16.msra.mxu0 %v1134_v14 }
  0x75   :  { %985 = vmatprep.subr.bf16.mxu0 %v1135_v15  ;;  %1040 = vmatpush3.bf16.msra.mxu1 %v1145_v41 }
  0x76   :  { %1041 = vmatprep.subr.bf16.mxu1 %v1337_v18 }
  0x78   :  { %986 = vmatpush3.bf16.msra.mxu0 %v1136_v16 }
  0x79   :  { %1049 = vmatprep.subr.bf16.mxu0 %v1337_v18  ;;  %1042 = vmatpush3.bf16.msra.mxu1 %v1146_v42 }
  0x7a   :  { %1043 = vmatprep.subr.bf16.mxu1 %v1337_v18 }
  0x7b   :  { %272 = vmatmul.mubr.bf16.vlgmr.msra.gmra.mrb[0].mxu0 %v1137_v17 }
  0x7c   :  { %1065 = vmatprep.mubr.msk.bf16.mxu0 %vm1338_vm0, %v1337_v18 }
  0x7d   :  { %1044 = vmatpush3.bf16.msra.mxu1 %v1147_v43 }
  0x7e   :  { %1069 = vmatprep.subr.bf16.mxu1 %v1337_v18 }
 0x14e   :  { %v987_v23 = vpop.f32.mrb[0].mxu0 }
 0x14f   :  { %v988_v25 = vpop.f32.mrb[1].mxu0 }
 0x150   :  { %v989_v26 = vadd.f32 %v988_v25, %v987_v23  ;;  %v990_v27 = vpop.f32.mrb[2].mxu0  ;;  %v1148_v23 = vld [vmem:[#allocation8 + $0x40] sm:$0xff]   ;;  %v1150_v25 = vld [vmem:[#allocation8 + $0x50] sm:$0xff]  }
 0x151   :  { %v991_v28 = vpop.f32.mrb[3].mxu0  ;;  %1050 = vmatpush3.bf16.msra.mxu0 %v1148_v23 }
 0x152   :  { %v274_v29 = vadd.f32 %v989_v26, %v132_v24  ;;  %v992_v30 = vadd.f32 %v991_v28, %v990_v27  ;;  %1051 = vmatprep.subr.bf16.mxu0 %v1337_v18  ;;  %v1151_v26 = vld [vmem:[#allocation8 + $0x58] sm:$0xff]   ;;  %v1152_v27 = vld [vmem:[#allocation8 + $0x60] sm:$0xff]   ;;  %v1153_v28 = vld [vmem:[#allocation8 + $0x68] sm:$0xff]  }
 0x154   :  { %v280_v31 = vmax.f32 %v274_v29, 0.0  ;;  %v277_v32 = vadd.f32 %v992_v30, %v132_v24  ;;  %v1149_v24 = vld [vmem:[#allocation8 + $0x48] sm:$0xff]   ;;  %v1154_v29 = vld [vmem:[#allocation8 + $0x70] sm:$0xff]   ;;  %v1155_v30 = vld [vmem:[#allocation8 + $0x78] sm:$0xff]  }
 0x155   :  { %1052 = vmatpush3.bf16.msra.mxu0 %v1149_v24 }
 0x156   :  { %v281_v33 = vmax.f32 %v277_v32, 0.0  ;;  %282 = vadd.xlane.f32.xlu0 %v280_v31  ;;  %v289_v34 = vmul.f32 %v280_v31, %v280_v31  ;;  %1053 = vmatprep.subr.bf16.mxu0 %v1337_v18 }
 0x158   :  { %291 = vadd.xlane.f32.xlu1 %v289_v34  ;;  %v290_v35 = vmul.f32 %v281_v33, %v281_v33 }
 0x159   :  { %1054 = vmatpush3.bf16.msra.mxu0 %v1150_v25 }
 0x15a   :  { %284 = vadd.xlane.f32.xlu0 %v281_v33  ;;  %1055 = vmatprep.subr.bf16.mxu0 %v1337_v18 }
 0x15c   :  { %293 = vadd.xlane.f32.xlu1 %v290_v35 }
 0x15d   :  { %1056 = vmatpush3.bf16.msra.mxu0 %v1151_v26 }
 0x15e   :  { %1057 = vmatprep.subr.bf16.mxu0 %v1337_v18 }
 0x161   :  { %1058 = vmatpush3.bf16.msra.mxu0 %v1152_v27 }
 0x162   :  { %1059 = vmatprep.subr.bf16.mxu0 %v1337_v18 }
 0x165   :  { %1060 = vmatpush3.bf16.msra.mxu0 %v1153_v28 }
 0x166   :  { %1061 = vmatprep.subr.bf16.mxu0 %v1337_v18 }
 0x169   :  { %1062 = vmatpush3.bf16.msra.mxu0 %v1154_v29 }
 0x16a   :  { %1063 = vmatprep.subr.bf16.mxu0 %v1337_v18 }
 0x16d   :  { %1064 = vmatpush3.bf16.msra.mxu0 %v1155_v30 }
 0x16e   :  { %1089 = vmatprep.subr.bf16.mxu0 %v1337_v18 }
 0x1e3   :  { %v283_v44 = vpop.xlane.xlu0 %282 }
 0x1e4   :  { %v287_v45 = vmul.f32 0.0078125, %v283_v44 }
 0x1e5   :  { %v292_v46 = vpop.xlane.xlu1 %291 }
 0x1e6   :  { %v297_v47 = vmul.f32 %v287_v45, %v287_v45  ;;  %v295_v48 = vmul.f32 0.0078125, %v292_v46  ;;  %v301_v59 = vsub.f32 %v280_v31, %v287_v45  ;;  %v463_v45 = vrot.slane %v337_v9, %v1476_v58 }
 0x1e7   :  { %v285_v49 = vpop.xlane.xlu0 %284 }
 0x1e8   :  { %v299_v50 = vsub.f32 %v295_v48, %v297_v47  ;;  %v288_v51 = vmul.f32 0.0078125, %v285_v49  ;;  %v469_v48 = vrot.slane %v337_v9, %v1481_v63 }
 0x1e9   :  { %v294_v52 = vpop.xlane.xlu1 %293 }
 0x1ea   :  { %v303_v53 = vadd.f32 1e-05, %v299_v50  ;;  %v298_v54 = vmul.f32 %v288_v51, %v288_v51  ;;  %v296_v55 = vmul.f32 0.0078125, %v294_v52  ;;  %v302_v0 = vsub.f32 %v281_v33, %v288_v51 }
 0x1ec   :  { %1172 = vrsqrt.f32 %v303_v53  ;;  %v300_v56 = vsub.f32 %v296_v55, %v298_v54 }
 0x1ee   :  { %v304_v57 = vadd.f32 1e-05, %v300_v56 }
 0x1f0   :  { %1174 = vrsqrt.f32 %v304_v57 }
 0x1f6   :  { %v1173_v60 = vpop.eup %1172 }
 0x1f7   :  { %v307_v62 = vmul.f32 %v1173_v60, %v301_v59 }
 0x1f9   :  { %v313_v3 = vmul.f32 %v312_v61, %v307_v62 }
 0x1fa   :  { %v1175_v1 = vpop.eup %1174 }
 0x1fb   :  { %v308_v2 = vmul.f32 %v1175_v1, %v302_v0  ;;  %v1485_v6 = vadd.f32 %v318_v4, %v313_v3 }
 0x1fd   :  { %v314_v5 = vmul.f32 %v312_v61, %v308_v2  ;;  %v944_v61 = vld [vmem:[%s1575_s4 + $0x4] sm:$0x7] }
 0x1fe   :  { %v497_v62 = vrot.slane %v944_v61, %v1457_v21 }
 0x1ff   :  { %v1487_v7 = vadd.f32 %v318_v4, %v314_v5 }
 0x201   :  { %v338_v8 = vpack.c.bf16 %v1487_v7, %v1485_v6 }
 0x203   :  { %1046 = vmatmul.mubr.bf16.vlgmr.msra.gmra.mrb[0].mxu1 %v338_v8 }
 0x204   :  { %1085 = vmatprep.mubr.msk.bf16.mxu1 %vm1338_vm0, %v1337_v18 }
 0x2d6   :  { %v425_v11 = vpop.f32.mrb[0].mxu1 }
 0x2d7   :  { %v426_v12 = vadd.f32 %v425_v11, %v342_v10  ;;  %v1047_v13 = vpop.f32.mrb[1].mxu1  ;;  %v1157_v11 = vld [vmem:[#allocation8 + $0x88] sm:$0xff]  }
 0x2d8   :  { %v428_v14 = vpop.f32.mrb[2].mxu1  ;;  %v1159_v13 = vld [vmem:[#allocation8 + $0x98] sm:$0xff]  }
 0x2d9   :  { %v432_v15 = vmax.f32 %v426_v12, 0.0  ;;  %v429_v16 = vadd.f32 %v428_v14, %v342_v10  ;;  %v1048_v17 = vpop.f32.mrb[3].mxu1  ;;  %v1156_v10 = vld [vmem:[#allocation8 + $0x80] sm:$0xff]   ;;  %v1158_v12 = vld [vmem:[#allocation8 + $0x90] sm:$0xff]  }
 0x2da   :  { %1070 = vmatpush3.bf16.msra.mxu1 %v1156_v10  ;;  %v1160_v14 = vld [vmem:[#allocation8 + $0xa0] sm:$0xff]   ;;  %v1163_v17 = vld [vmem:[#allocation8 + $0xb8] sm:$0xff]  }
 0x2db   :  { %v433_v19 = vmax.f32 %v429_v16, 0.0  ;;  %434 = vadd.xlane.f32.xlu0 %v432_v15  ;;  %v440_v20 = vmul.f32 %v432_v15, %v432_v15  ;;  %1071 = vmatprep.subr.bf16.mxu1 %v1337_v18  ;;  %v1162_v16 = vld [vmem:[#allocation8 + $0xb0] sm:$0xff]  }
 0x2dd   :  { %436 = vadd.xlane.f32.xlu1 %v433_v19  ;;  %v441_v22 = vmul.f32 %v433_v19, %v433_v19 }
 0x2de   :  { %1072 = vmatpush3.bf16.msra.mxu1 %v1157_v11 }
 0x2df   :  { %442 = vadd.xlane.f32.xlu0 %v440_v20  ;;  %1073 = vmatprep.subr.bf16.mxu1 %v1337_v18 }
 0x2e1   :  { %444 = vadd.xlane.f32.xlu1 %v441_v22 }
 0x2e2   :  { %1074 = vmatpush3.bf16.msra.mxu1 %v1158_v12 }
 0x2e3   :  { %1075 = vmatprep.subr.bf16.mxu1 %v1337_v18 }
 0x2e6   :  { %1076 = vmatpush3.bf16.msra.mxu1 %v1159_v13 }
 0x2e7   :  { %1077 = vmatprep.subr.bf16.mxu1 %v1337_v18 }
 0x2ea   :  { %1078 = vmatpush3.bf16.msra.mxu1 %v1160_v14 }
 0x2eb   :  { %1079 = vmatprep.subr.bf16.mxu1 %v1337_v18 }
 0x368   :  { %v435_v31 = vpop.xlane.xlu0 %434 }
 0x369   :  { %v438_v32 = vmul.f32 0.0078125, %v435_v31 }
 0x36a   :  { %v437_v33 = vpop.xlane.xlu1 %436 }
 0x36b   :  { %v439_v34 = vmul.f32 0.0078125, %v437_v33  ;;  %v448_v36 = vmul.f32 %v438_v32, %v438_v32  ;;  %v452_v46 = vsub.f32 %v432_v15, %v438_v32  ;;  %v1161_v15 = vld [vmem:[#allocation8 + $0xa8] sm:$0xff]  }
 0x36c   :  { %v443_v35 = vpop.xlane.xlu0 %442  ;;  %1080 = vmatpush3.bf16.msra.mxu1 %v1161_v15 }
 0x36d   :  { %v446_v37 = vmul.f32 0.0078125, %v443_v35  ;;  %v449_v39 = vmul.f32 %v439_v34, %v439_v34  ;;  %v453_v49 = vsub.f32 %v433_v19, %v439_v34  ;;  %1081 = vmatprep.subr.bf16.mxu1 %v1337_v18  ;;  %v618_v34 = vrot.slane %v944_v61, %v1476_v58 }
 0x36e   :  { %v445_v38 = vpop.xlane.xlu1 %444 }
 0x36f   :  { %v450_v40 = vsub.f32 %v446_v37, %v448_v36  ;;  %v447_v41 = vmul.f32 0.0078125, %v445_v38  ;;  %v624_v37 = vrot.slane %v944_v61, %v1481_v63 }
 0x370   :  { %1082 = vmatpush3.bf16.msra.mxu1 %v1162_v16 }
 0x371   :  { %v454_v42 = vadd.f32 1e-05, %v450_v40  ;;  %v451_v43 = vsub.f32 %v447_v41, %v449_v39  ;;  %1083 = vmatprep.subr.bf16.mxu1 %v1337_v18 }
 0x373   :  { %1176 = vrsqrt.f32 %v454_v42  ;;  %v455_v44 = vadd.f32 1e-05, %v451_v43 }
 0x374   :  { %1084 = vmatpush3.bf16.msra.mxu1 %v1163_v17 }
 0x375   :  { %1178 = vrsqrt.f32 %v455_v44 }
 0x37d   :  { %v1177_v47 = vpop.eup %1176 }
 0x37e   :  { %v458_v50 = vmul.f32 %v1177_v47, %v452_v46 }
 0x37f   :  { %v1179_v51 = vpop.eup %1178 }
 0x380   :  { %v459_v52 = vmul.f32 %v1179_v51, %v453_v49  ;;  %v464_v53 = vmul.f32 %v463_v45, %v458_v50  ;;  %v953_v49 = vld [vmem:[%s1575_s4 + $0x8] sm:$0x7] }
 0x381   :  { %v652_v50 = vrot.slane %v953_v49, %v1457_v21  ;;  %v1166_v21 = vld [vmem:[#allocation10 + $0x10] sm:$0xff]  }
 0x382   :  { %v465_v54 = vmul.f32 %v463_v45, %v459_v52  ;;  %v470_v55 = vadd.f32 %v469_v48, %v464_v53 }
 0x384   :  { %v471_v56 = vadd.f32 %v469_v48, %v465_v54  ;;  %v1508_v57 = vadd.f32 %v470_v55, %v1485_v6 }
 0x386   :  { %v1511_v59 = vadd.f32 %v471_v56, %v1487_v7 }
 0x388   :  { %v493_v60 = vpack.c.bf16 %v1511_v59, %v1508_v57 }
 0x38a   :  { %1066 = vmatmul.mubr.bf16.vlgmr.msra.gmra.mrb[4].mxu0 %v493_v60 }
 0x38b   :  { %1105 = vmatprep.mubr.msk.bf16.mxu0 %vm1338_vm0, %v1337_v18 }
 0x45d   :  { %v580_v0 = vpop.f32.mrb[4].mxu0 }
 0x45e   :  { %v581_v1 = vadd.f32 %v580_v0, %v497_v62  ;;  %v1067_v2 = vpop.f32.mrb[5].mxu0  ;;  %v1165_v0 = vld [vmem:[#allocation10 + $0x8] sm:$0xff]  }
 0x45f   :  { %v583_v3 = vpop.f32.mrb[6].mxu0  ;;  %v1168_v2 = vld [vmem:[#allocation10 + $0x20] sm:$0xff]  }
 0x460   :  { %v587_v4 = vmax.f32 %v581_v1, 0.0  ;;  %v584_v5 = vadd.f32 %v583_v3, %v497_v62  ;;  %v1068_v6 = vpop.f32.mrb[7].mxu0  ;;  %v1164_v62 = vld [vmem:[#allocation10] sm:$0xff]   ;;  %v1167_v1 = vld [vmem:[#allocation10 + $0x18] sm:$0xff]   ;;  %v1169_v3 = vld [vmem:[#allocation10 + $0x28] sm:$0xff]  }
 0x461   :  { %1090 = vmatpush3.bf16.msra.mxu0 %v1164_v62 }
 0x462   :  { %v588_v7 = vmax.f32 %v584_v5, 0.0  ;;  %589 = vadd.xlane.f32.xlu0 %v587_v4  ;;  %v595_v8 = vmul.f32 %v587_v4, %v587_v4  ;;  %1091 = vmatprep.subr.bf16.mxu0 %v1337_v18  ;;  %v1171_v5 = vld [vmem:[#allocation10 + $0x38] sm:$0xff]  }
 0x464   :  { %591 = vadd.xlane.f32.xlu1 %v588_v7  ;;  %v596_v9 = vmul.f32 %v588_v7, %v588_v7 }
 0x465   :  { %1092 = vmatpush3.bf16.msra.mxu0 %v1165_v0 }
 0x466   :  { %597 = vadd.xlane.f32.xlu0 %v595_v8  ;;  %1093 = vmatprep.subr.bf16.mxu0 %v1337_v18 }
 0x468   :  { %599 = vadd.xlane.f32.xlu1 %v596_v9 }
 0x469   :  { %1094 = vmatpush3.bf16.msra.mxu0 %v1166_v21 }
 0x46a   :  { %1095 = vmatprep.subr.bf16.mxu0 %v1337_v18 }
 0x46d   :  { %1096 = vmatpush3.bf16.msra.mxu0 %v1167_v1 }
 0x46e   :  { %1097 = vmatprep.subr.bf16.mxu0 %v1337_v18 }
 0x471   :  { %1098 = vmatpush3.bf16.msra.mxu0 %v1168_v2 }
 0x472   :  { %1099 = vmatprep.subr.bf16.mxu0 %v1337_v18 }
 0x475   :  { %1100 = vmatpush3.bf16.msra.mxu0 %v1169_v3 }
 0x476   :  { %1101 = vmatprep.subr.bf16.mxu0 %v1337_v18 }
 0x4ef   :  { %v590_v19 = vpop.xlane.xlu0 %589 }
 0x4f0   :  { %v593_v20 = vmul.f32 0.0078125, %v590_v19 }
 0x4f1   :  { %v592_v22 = vpop.xlane.xlu1 %591 }
 0x4f2   :  { %v594_v23 = vmul.f32 0.0078125, %v592_v22  ;;  %v603_v25 = vmul.f32 %v593_v20, %v593_v20  ;;  %v607_v35 = vsub.f32 %v587_v4, %v593_v20  ;;  %v1170_v4 = vld [vmem:[#allocation10 + $0x30] sm:$0xff]   ;;  %v773_v22 = vrot.slane %v953_v49, %v1476_v58  ;;  %v962_v58 = vld [vmem:[%s1577_s6] ss:$0 sm:$0xff] }
 0x4f3   :  { %v598_v24 = vpop.xlane.xlu0 %597  ;;  %1102 = vmatpush3.bf16.msra.mxu0 %v1170_v4 }
 0x4f4   :  { %v601_v26 = vmul.f32 0.0078125, %v598_v24  ;;  %v604_v28 = vmul.f32 %v594_v23, %v594_v23  ;;  %v608_v38 = vsub.f32 %v588_v7, %v594_v23  ;;  %1103 = vmatprep.subr.bf16.mxu0 %v1337_v18  ;;  %v779_v24 = vrot.slane %v953_v49, %v1481_v63 }
 0x4f5   :  { %v600_v27 = vpop.xlane.xlu1 %599 }
 0x4f6   :  { %v605_v29 = vsub.f32 %v601_v26, %v603_v25  ;;  %v602_v30 = vmul.f32 0.0078125, %v600_v27 }
 0x4f7   :  { %1104 = vmatpush3.bf16.msra.mxu0 %v1171_v5 }
 0x4f8   :  { %v609_v31 = vadd.f32 1e-05, %v605_v29  ;;  %v606_v32 = vsub.f32 %v602_v30, %v604_v28 }
 0x4fa   :  { %1180 = vrsqrt.f32 %v609_v31  ;;  %v610_v33 = vadd.f32 1e-05, %v606_v32 }
 0x4fc   :  { %1182 = vrsqrt.f32 %v610_v33 }
 0x504   :  { %v1181_v36 = vpop.eup %1180 }
 0x505   :  { %v613_v39 = vmul.f32 %v1181_v36, %v607_v35 }
 0x506   :  { %v1183_v40 = vpop.eup %1182 }
 0x507   :  { %v614_v41 = vmul.f32 %v1183_v40, %v608_v38  ;;  %v619_v42 = vmul.f32 %v618_v34, %v613_v39 }
 0x509   :  { %v620_v43 = vmul.f32 %v618_v34, %v614_v41  ;;  %v625_v44 = vadd.f32 %v624_v37, %v619_v42 }
 0x50b   :  { %v626_v45 = vadd.f32 %v624_v37, %v620_v43  ;;  %v1531_v46 = vadd.f32 %v625_v44, %v1508_v57 }
 0x50d   :  { %v1534_v47 = vadd.f32 %v626_v45, %v1511_v59 }
 0x50f   :  { %v648_v48 = vpack.c.bf16 %v1534_v47, %v1531_v46 }
 0x511   :  { %1086 = vmatmul.mubr.bf16.vlgmr.msra.gmra.mrb[4].mxu1 %v648_v48 }
 0x5e4   :  { %v735_v51 = vpop.f32.mrb[4].mxu1 }
 0x5e5   :  { %v736_v52 = vadd.f32 %v735_v51, %v652_v50  ;;  %v1087_v53 = vpop.f32.mrb[5].mxu1 }
 0x5e6   :  { %v738_v54 = vpop.f32.mrb[6].mxu1 }
 0x5e7   :  { %v742_v55 = vmax.f32 %v736_v52, 0.0  ;;  %v739_v56 = vadd.f32 %v738_v54, %v652_v50  ;;  %v1088_v57 = vpop.f32.mrb[7].mxu1 }
 0x5e9   :  { %v743_v60 = vmax.f32 %v739_v56, 0.0  ;;  %744 = vadd.xlane.f32.xlu0 %v742_v55  ;;  %v750_v59 = vmul.f32 %v742_v55, %v742_v55 }
 0x5eb   :  { %746 = vadd.xlane.f32.xlu1 %v743_v60  ;;  %v751_v61 = vmul.f32 %v743_v60, %v743_v60 }
 0x5ed   :  { %752 = vadd.xlane.f32.xlu0 %v750_v59 }
 0x5ef   :  { %754 = vadd.xlane.f32.xlu1 %v751_v61 }
 0x676   :  { %v745_v6 = vpop.xlane.xlu0 %744 }
 0x677   :  { %v748_v7 = vmul.f32 0.0078125, %v745_v6 }
 0x678   :  { %v747_v8 = vpop.xlane.xlu1 %746 }
 0x679   :  { %v749_v9 = vmul.f32 0.0078125, %v747_v8  ;;  %v758_v11 = vmul.f32 %v748_v7, %v748_v7  ;;  %v762_v18 = vsub.f32 %v742_v55, %v748_v7 }
 0x67a   :  { %v753_v10 = vpop.xlane.xlu0 %752 }
 0x67b   :  { %v756_v12 = vmul.f32 0.0078125, %v753_v10  ;;  %v759_v14 = vmul.f32 %v749_v9, %v749_v9  ;;  %v763_v25 = vsub.f32 %v743_v60, %v749_v9 }
 0x67c   :  { %v755_v13 = vpop.xlane.xlu1 %754 }
 0x67d   :  { %v760_v15 = vsub.f32 %v756_v12, %v758_v11  ;;  %v757_v16 = vmul.f32 0.0078125, %v755_v13 }
 0x67f   :  { %v764_v17 = vadd.f32 1e-05, %v760_v15  ;;  %v761_v19 = vsub.f32 %v757_v16, %v759_v14 }
 0x681   :  { %1184 = vrsqrt.f32 %v764_v17  ;;  %v765_v20 = vadd.f32 1e-05, %v761_v19 }
 0x683   :  { %1186 = vrsqrt.f32 %v765_v20 }
 0x68b   :  { %v1185_v23 = vpop.eup %1184 }
 0x68c   :  { %v768_v26 = vmul.f32 %v1185_v23, %v762_v18 }
 0x68d   :  { %v1187_v27 = vpop.eup %1186 }
 0x68e   :  { %v769_v28 = vmul.f32 %v1187_v27, %v763_v25  ;;  %v774_v29 = vmul.f32 %v773_v22, %v768_v26 }
 0x690   :  { %v775_v30 = vmul.f32 %v773_v22, %v769_v28  ;;  %v780_v31 = vadd.f32 %v779_v24, %v774_v29 }
 0x692   :  { %v781_v32 = vadd.f32 %v779_v24, %v775_v30  ;;  %v782_v33 = vadd.f32 %v780_v31, %v1531_v46 }
 0x694   :  { %v783_v34 = vadd.f32 %v781_v32, %v1534_v47 }
 0x696   :  { %v784_v35 = vpack.c.bf16 %v783_v34, %v782_v33 }
 0x698   :  { %1106 = vmatmul.mubr.bf16.vlgmr.msra.gmra.mrb[8].mxu0 %v784_v35 }
 0x76b   :  { %v890_v36 = vpop.f32.mrb[8].mxu0 }
 0x76c   :  { %v891_v63 = vadd.f32 %v962_v58, %v890_v36  ;;  %v1107_v37 = vpop.f32.mrb[9].mxu0 }
 0x76d   :  { %v893_v38 = vpop.f32.mrb[10].mxu0 }
 0x76e   :  { %897 = vst [vmem:[#allocation11] sm:$0xff] %v891_v63  ;;  %v894_v39 = vadd.f32 %v962_v58, %v893_v38  ;;  %v1108_v40 = vpop.f32.mrb[11].mxu0 }
 0x770   :  { %898 = vst [vmem:[#allocation11 + $0x8] sm:$0xff] %v894_v39 }
 0x771   :  { %1309 = shalt.err (!%p1306_p2)
}
 0x772   :  { %s1310_s27 = scalar_lea.hbm %s1578_s7, 256 }
 0x773   :  { %p1311_p3 = scmp.ne.s32.totalorder %s1578_s7, %s1310_s27  ;;  %p1314_p4 = scmp.lt.u32.totalorder %s1310_s27, %s1578_s7 }
 0x775   :  { %p1316_p5 = pnand %p1314_p4, %p1311_p3 }
 0x777   :  { %1319 = shalt.err (!%p1316_p5)
}
 0x778   :  { %910 = dma.vmem_to_hbm [thread:$0]  %s905_s26, 256, %s1578_s7, [#allocation4], %s1333_s3, %s1333_s3, %s1334_s15  }
 0x779   :  { %1326 = dma.done.wait [#allocation4], 256  }
 0x77a   :  { %1327 = vsyncadd [#allocation4], 4294967040 }
 0x77b   :  { %914 = vsyncpa [#allocation3], 1 }
 0x77c   :  { %915 = vsyncpa [#allocation6], 1 }
 0x77d   :  { %916 = vsyncpa [#allocation9], 1 }
 0x77e   :  { %917 = vsyncpa [#allocation4], 1 }

</bundles_post_ra>
